<compile_context>
chip_gen: v5e
topology: v5e:2x2
jax: 0.10.0
libtpu: 0.0.40
codegen_flags: <defaults>
</compile_context>

<pallas_src>
import functools

import jax
import jax.numpy as jnp
from jax.experimental import pallas as pl
from jax.experimental.pallas import tpu as pltpu

LANE = 128  # feature dims are padded to a multiple of the lane width


def _round_up(v, m):
    return ((v + m - 1) // m) * m


def _sage_fused_kernel(a_ref, dinv_ref, x_ref, w_ref, b_ref, o_ref, cat_ref,
                       *, num_layers, f_out_last, p):
    """All SAGEConv layers fused; bf16 activation resident in VMEM scratch."""
    a = a_ref[...]                                   # [N, N] bf16 (0/1 mask, exact)
    dinv = dinv_ref[...]                             # [N, 1] f32 (mean normalization)

    def finalize(out_f32):
        # mask padded lanes so they do not corrupt the softmax normalization
        lane = jax.lax.broadcasted_iota(jnp.int32, out_f32.shape, 1)
        out_f32 = jnp.where(lane < f_out_last, out_f32, -1e30)
        m = jnp.max(out_f32, axis=-1, keepdims=True)
        s = out_f32 - m
        lse = jnp.log(jnp.sum(jnp.exp(s), axis=-1, keepdims=True))
        o_ref[...] = (s - lse).astype(o_ref.dtype)   # lane-dense store

    # ---- layer 0 (peeled): reads x_ref directly, no staging copy ----
    x = x_ref[...]                                   # [N, P] bf16
    agg = jnp.dot(a, x, preferred_element_type=jnp.float32) * dinv   # f32
    w0 = w_ref[0]                                    # [2P, P] bf16
    out = (jnp.dot(agg.astype(jnp.bfloat16), w0[0:p, :],
                   preferred_element_type=jnp.float32)
           + jnp.dot(x, w0[p:2 * p, :], preferred_element_type=jnp.float32)
           + b_ref[0])                               # [N, P] f32
    if num_layers == 1:
        finalize(out)
        return
    # TODO(synk): dropout between layers is identity here (eval mode).
    cat_ref[:, p:2 * p] = jnp.maximum(out, 0.0).astype(jnp.bfloat16)  # ReLU in f32, store bf16

    # ---- layers 1 .. L-1: activation resident in cat_ref[:, P:2P) ----
    for li in range(1, num_layers):                  # static unroll (L is small)
        h = cat_ref[:, p:2 * p]                      # [N, P] bf16
        agg = jnp.dot(a, h, preferred_element_type=jnp.float32) * dinv
        cat_ref[:, 0:p] = agg.astype(jnp.bfloat16)   # only agg changes -> no concat temp
        out = (jnp.dot(cat_ref[...], w_ref[li],      # single K=2P bf16 MXU call
                       preferred_element_type=jnp.float32)
               + b_ref[li])                          # [N, P] f32
        if li < num_layers - 1:
            cat_ref[:, p:2 * p] = jnp.maximum(out, 0.0).astype(jnp.bfloat16)
        else:
            finalize(out)


def sage_forward(x, a, params):
    """Full SAGE forward in a single fused pallas_call."""
    n, in_c = x.shape
    num_layers = len(params)
    dims = [in_c] + [w_l.shape[1] for (w_l, _, _) in params]
    p = _round_up(max(dims), LANE)                   # supports channels > 128 too
    f_out_last = params[-1][0].shape[1]

    # Pad features to P lanes; matmul operands are bf16 (accumulation stays f32).
    x_p = jnp.zeros((n, p), jnp.float32).at[:, :in_c].set(x).astype(jnp.bfloat16)

    # Stack per-layer weights as [W_l ; W_r] -> [2P, P] so the projection is one dot.
    w_list, b_list = [], []
    for (w_l, w_r, b) in params:
        f_in, f_out = w_l.shape
        w_cat = jnp.zeros((2 * p, p), jnp.float32)
        w_cat = w_cat.at[:f_in, :f_out].set(w_l)
        w_cat = w_cat.at[p:p + f_in, :f_out].set(w_r)
        w_list.append(w_cat)
        b_list.append(jnp.zeros((1, p), jnp.float32).at[0, :f_out].set(b))
    w_stack = jnp.stack(w_list).astype(jnp.bfloat16)          # [L, 2P, P] bf16
    b_stack = jnp.stack(b_list)                               # [L, 1, P]  f32

    a_bf16 = a.astype(jnp.bfloat16)                           # 0/1 mask: exact in bf16
    deg = jnp.sum(a, axis=-1, keepdims=True)                  # computed once outside
    deg_inv = jnp.where(deg > 0.0, 1.0 / deg, 0.0).astype(jnp.float32)   # [N, 1]

    kernel = functools.partial(_sage_fused_kernel, num_layers=num_layers,
                               f_out_last=f_out_last, p=p)

    # Explicit VMEM budget: double-buffered inputs/outputs + persistent scratch.
    io_bytes = sum(int(t.size) * t.dtype.itemsize
                   for t in (a_bf16, deg_inv, x_p, w_stack, b_stack))
    io_bytes += n * p * 4                                     # f32 output block
    scratch_bytes = n * 2 * p * 2                             # bf16 [N, 2P] scratch
    vmem_limit = int(min(max(2 * io_bytes + scratch_bytes + (1 << 20), 4 << 20),
                         32 << 20))

    out_p = pl.pallas_call(
        kernel,
        out_shape=jax.ShapeDtypeStruct((n, p), jnp.float32),
        grid_spec=pltpu.PrefetchScalarGridSpec(
            num_scalar_prefetch=0,
            grid=(1,),
            in_specs=[
                pl.BlockSpec(a_bf16.shape, lambda i: (0, 0)),
                pl.BlockSpec(deg_inv.shape, lambda i: (0, 0)),
                pl.BlockSpec(x_p.shape, lambda i: (0, 0)),
                pl.BlockSpec(w_stack.shape, lambda i: (0, 0, 0)),
                pl.BlockSpec(b_stack.shape, lambda i: (0, 0, 0)),
            ],
            out_specs=pl.BlockSpec((n, p), lambda i: (0, 0)),
            scratch_shapes=[pltpu.VMEM((n, 2 * p), jnp.bfloat16)],
        ),
        compiler_params=pltpu.CompilerParams(
            dimension_semantics=("arbitrary",),
            vmem_limit_bytes=vmem_limit),
    )(a_bf16, deg_inv, x_p, w_stack, b_stack)

    return out_p[:, :f_out_last]                              # drop padded lanes


def sage_reference(x, a, params, operand_dtype=jnp.float32):
    """Pure-JAX reference (PyG-equivalent, eval mode).

    operand_dtype=jnp.bfloat16 mirrors the kernel's bf16 matmul operands with
    f32 accumulation; jnp.float32 gives the exact PyTorch-module numerics.
    """
    deg = jnp.sum(a, axis=-1, keepdims=True)
    deg_inv = jnp.where(deg > 0.0, 1.0 / deg, 0.0)
    h = x
    for li, (w_l, w_r, b) in enumerate(params):
        hd = h.astype(operand_dtype)
        agg = jnp.dot(a.astype(operand_dtype), hd,
                      preferred_element_type=jnp.float32) * deg_inv
        out = (jnp.dot(agg.astype(operand_dtype), w_l.astype(operand_dtype),
                       preferred_element_type=jnp.float32)
               + jnp.dot(hd, w_r.astype(operand_dtype),
                         preferred_element_type=jnp.float32)
               + b)
        if li < len(params) - 1:
            h = jnp.maximum(out, 0.0)
        else:
            h = jax.nn.log_softmax(out, axis=-1)
    return h


def init_params(key, in_channels, hidden_channels, out_channels, num_layers):
    """Deterministic SAGEConv parameters: (W_l, W_r, b) per layer, W stored [F_in, F_out]."""
    dims = [in_channels] + [hidden_channels] * (num_layers - 1) + [out_channels]
    params = []
    for li in range(num_layers):
        f_in, f_out = dims[li], dims[li + 1]
        key, k1, k2 = jax.random.split(key, 3)
        scale = 1.0 / jnp.sqrt(jnp.float32(f_in))
        w_l = jax.random.uniform(k1, (f_in, f_out), jnp.float32, -scale, scale)
        w_r = jax.random.uniform(k2, (f_in, f_out), jnp.float32, -scale, scale)
        b = jnp.zeros((f_out,), jnp.float32)
        params.append((w_l, w_r, b))
    return params


if __name__ == "__main__":
    key = jax.random.PRNGKey(0)

    N = 64              # number of graph nodes
    IN_C, HID_C, OUT_C = 16, 32, 8
    NUM_LAYERS = 3
    DROPOUT = 0.5       # eval mode -> no-op

    key, kx, ka = jax.random.split(key, 3)
    x = jax.random.normal(kx, (N, IN_C), jnp.float32)
    # dense adjacency: ~10% edge density, no self loops
    a = (jax.random.uniform(ka, (N, N)) < 0.1).astype(jnp.float32)
    a = a * (1.0 - jnp.eye(N, dtype=jnp.float32))

    params = init_params(key, IN_C, HID_C, OUT_C, NUM_LAYERS)

    out = sage_forward(x, a, params)
    out = jax.block_until_ready(out)

    assert out.shape == (N, OUT_C), out.shape
    # exact property: log_softmax rows exp-sum to ~1 (independent of operand dtype)
    assert jnp.allclose(jnp.sum(jnp.exp(out), axis=-1), 1.0, atol=1e-4)
    # tight check vs a reference that also feeds bf16 matmul operands (f32 accumulate)
    ref_bf16 = sage_reference(x, a, params, operand_dtype=jnp.bfloat16)
    err_bf16 = float(jnp.max(jnp.abs(out - ref_bf16)))
    assert err_bf16 < 1e-2, err_bf16
    # looser check vs the pure-f32 PyG-equivalent reference (bf16 operand rounding)
    ref_f32 = sage_reference(x, a, params, operand_dtype=jnp.float32)
    err_f32 = float(jnp.max(jnp.abs(out - ref_f32)))
    assert err_f32 < 5e-2, err_f32
    print("KERNEL_OK")
</pallas_src>

<mosaic_0001>
module attributes {stable_mosaic.version = 11 : i64} {
  func.func @_sage_fused_kernel(%arg0: i32, %arg1: memref<64x64xbf16, #tpu.memory_space<vmem>>, %arg2: memref<64x1xf32, #tpu.memory_space<vmem>>, %arg3: memref<64x128xbf16, #tpu.memory_space<vmem>>, %arg4: memref<3x256x128xbf16, #tpu.memory_space<vmem>>, %arg5: memref<3x1x128xf32, #tpu.memory_space<vmem>>, %arg6: memref<64x128xf32, #tpu.memory_space<vmem>>, %arg7: memref<64x256xbf16, #tpu.memory_space<vmem>>) attributes {dimension_semantics = [#tpu.dimension_semantics<arbitrary>], iteration_bounds = array<i64: 1>, scalar_prefetch = 0 : i64, scratch_operands = 1 : i64, tpu.core_type = #tpu.core_type<tc>, window_params = [{pipeline_mode = #tpu.pipeline_mode<synchronous>, transform_indices = @transform_0, window_bounds = array<i64: 64, 64>}, {pipeline_mode = #tpu.pipeline_mode<synchronous>, transform_indices = @transform_1, window_bounds = array<i64: 64, 1>}, {pipeline_mode = #tpu.pipeline_mode<synchronous>, transform_indices = @transform_2, window_bounds = array<i64: 64, 128>}, {pipeline_mode = #tpu.pipeline_mode<synchronous>, transform_indices = @transform_3, window_bounds = array<i64: 3, 256, 128>}, {pipeline_mode = #tpu.pipeline_mode<synchronous>, transform_indices = @transform_4, window_bounds = array<i64: 3, 1, 128>}, {pipeline_mode = #tpu.pipeline_mode<synchronous>, transform_indices = @transform_5, window_bounds = array<i64: 64, 128>}]} {
    %c0 = arith.constant 0 : index
    %c0_0 = arith.constant 0 : index
    %0 = vector.load %arg1[%c0, %c0_0] : memref<64x64xbf16, #tpu.memory_space<vmem>>, vector<64x64xbf16>
    %c0_1 = arith.constant 0 : index
    %c0_2 = arith.constant 0 : index
    %1 = vector.load %arg2[%c0_1, %c0_2] : memref<64x1xf32, #tpu.memory_space<vmem>>, vector<64x1xf32>
    %c0_3 = arith.constant 0 : index
    %c0_4 = arith.constant 0 : index
    %2 = vector.load %arg3[%c0_3, %c0_4] : memref<64x128xbf16, #tpu.memory_space<vmem>>, vector<64x128xbf16>
    %cst = arith.constant dense<0.000000e+00> : vector<64x128xf32>
    %3 = tpu.matmul %0, %2, %cst {dimension_numbers = #tpu.dot_dimension_numbers<[1], [0], [0], [1], [0, 0, 1, 1], [], []>} : vector<64x64xbf16>, vector<64x128xbf16>, vector<64x128xf32> -> vector<64x128xf32>
    %4 = vector.broadcast %1 : vector<64x1xf32> to vector<64x128xf32>
    %5 = arith.mulf %3, %4 : vector<64x128xf32>
    %c0_5 = arith.constant 0 : index
    %c0_6 = arith.constant 0 : index
    %c0_7 = arith.constant 0 : index
    %6 = vector.load %arg4[%c0_5, %c0_6, %c0_7] : memref<3x256x128xbf16, #tpu.memory_space<vmem>>, vector<1x256x128xbf16>
    %7 = vector.shape_cast %6 : vector<1x256x128xbf16> to vector<256x128xbf16>
    %8 = arith.truncf %5 : vector<64x128xf32> to vector<64x128xbf16>
    %9 = vector.extract_strided_slice %7 {offsets = [0, 0], sizes = [128, 128], strides = [1, 1]} : vector<256x128xbf16> to vector<128x128xbf16>
    %cst_8 = arith.constant dense<0.000000e+00> : vector<64x128xf32>
    %10 = tpu.matmul %8, %9, %cst_8 {dimension_numbers = #tpu.dot_dimension_numbers<[1], [0], [0], [1], [0, 0, 1, 1], [], []>} : vector<64x128xbf16>, vector<128x128xbf16>, vector<64x128xf32> -> vector<64x128xf32>
    %11 = vector.extract_strided_slice %7 {offsets = [128, 0], sizes = [128, 128], strides = [1, 1]} : vector<256x128xbf16> to vector<128x128xbf16>
    %cst_9 = arith.constant dense<0.000000e+00> : vector<64x128xf32>
    %12 = tpu.matmul %2, %11, %cst_9 {dimension_numbers = #tpu.dot_dimension_numbers<[1], [0], [0], [1], [0, 0, 1, 1], [], []>} : vector<64x128xbf16>, vector<128x128xbf16>, vector<64x128xf32> -> vector<64x128xf32>
    %13 = arith.addf %10, %12 : vector<64x128xf32>
    %c0_10 = arith.constant 0 : index
    %c0_11 = arith.constant 0 : index
    %c0_12 = arith.constant 0 : index
    %14 = vector.load %arg5[%c0_10, %c0_11, %c0_12] : memref<3x1x128xf32, #tpu.memory_space<vmem>>, vector<1x1x128xf32>
    %15 = vector.shape_cast %14 : vector<1x1x128xf32> to vector<1x128xf32>
    %16 = vector.broadcast %15 : vector<1x128xf32> to vector<64x128xf32>
    %17 = arith.addf %13, %16 : vector<64x128xf32>
    %cst_13 = arith.constant 0.000000e+00 : f32
    %18 = vector.broadcast %cst_13 : f32 to vector<64x128xf32>
    %19 = arith.maximumf %17, %18 : vector<64x128xf32>
    %20 = arith.truncf %19 : vector<64x128xf32> to vector<64x128xbf16>
    %c0_14 = arith.constant 0 : index
    %c128 = arith.constant 128 : index
    %21 = vector.load %arg7[%c0_14, %c128] : memref<64x256xbf16, #tpu.memory_space<vmem>>, vector<64x128xbf16>
    tpu.vector_store %arg7[%c0_14, %c128], %20 {strides = array<i32>} : memref<64x256xbf16, #tpu.memory_space<vmem>>, vector<64x128xbf16>,
    %c0_15 = arith.constant 0 : index
    %c128_16 = arith.constant 128 : index
    %22 = vector.load %arg7[%c0_15, %c128_16] : memref<64x256xbf16, #tpu.memory_space<vmem>>, vector<64x128xbf16>
    %cst_17 = arith.constant dense<0.000000e+00> : vector<64x128xf32>
    %23 = tpu.matmul %0, %22, %cst_17 {dimension_numbers = #tpu.dot_dimension_numbers<[1], [0], [0], [1], [0, 0, 1, 1], [], []>} : vector<64x64xbf16>, vector<64x128xbf16>, vector<64x128xf32> -> vector<64x128xf32>
    %24 = vector.broadcast %1 : vector<64x1xf32> to vector<64x128xf32>
    %25 = arith.mulf %23, %24 : vector<64x128xf32>
    %26 = arith.truncf %25 : vector<64x128xf32> to vector<64x128xbf16>
    %c0_18 = arith.constant 0 : index
    %c0_19 = arith.constant 0 : index
    %27 = vector.load %arg7[%c0_18, %c0_19] : memref<64x256xbf16, #tpu.memory_space<vmem>>, vector<64x128xbf16>
    tpu.vector_store %arg7[%c0_18, %c0_19], %26 {strides = array<i32>} : memref<64x256xbf16, #tpu.memory_space<vmem>>, vector<64x128xbf16>,
    %c0_20 = arith.constant 0 : index
    %c0_21 = arith.constant 0 : index
    %28 = vector.load %arg7[%c0_20, %c0_21] : memref<64x256xbf16, #tpu.memory_space<vmem>>, vector<64x256xbf16>
    %c1 = arith.constant 1 : index
    %c0_22 = arith.constant 0 : index
    %c0_23 = arith.constant 0 : index
    %29 = vector.load %arg4[%c1, %c0_22, %c0_23] : memref<3x256x128xbf16, #tpu.memory_space<vmem>>, vector<1x256x128xbf16>
    %30 = vector.shape_cast %29 : vector<1x256x128xbf16> to vector<256x128xbf16>
    %cst_24 = arith.constant dense<0.000000e+00> : vector<64x128xf32>
    %31 = tpu.matmul %28, %30, %cst_24 {dimension_numbers = #tpu.dot_dimension_numbers<[1], [0], [0], [1], [0, 0, 1, 1], [], []>} : vector<64x256xbf16>, vector<256x128xbf16>, vector<64x128xf32> -> vector<64x128xf32>
    %c1_25 = arith.constant 1 : index
    %c0_26 = arith.constant 0 : index
    %c0_27 = arith.constant 0 : index
    %32 = vector.load %arg5[%c1_25, %c0_26, %c0_27] : memref<3x1x128xf32, #tpu.memory_space<vmem>>, vector<1x1x128xf32>
    %33 = vector.shape_cast %32 : vector<1x1x128xf32> to vector<1x128xf32>
    %34 = vector.broadcast %33 : vector<1x128xf32> to vector<64x128xf32>
    %35 = arith.addf %31, %34 : vector<64x128xf32>
    %cst_28 = arith.constant 0.000000e+00 : f32
    %36 = vector.broadcast %cst_28 : f32 to vector<64x128xf32>
    %37 = arith.maximumf %35, %36 : vector<64x128xf32>
    %38 = arith.truncf %37 : vector<64x128xf32> to vector<64x128xbf16>
    %c0_29 = arith.constant 0 : index
    %c128_30 = arith.constant 128 : index
    %39 = vector.load %arg7[%c0_29, %c128_30] : memref<64x256xbf16, #tpu.memory_space<vmem>>, vector<64x128xbf16>
    tpu.vector_store %arg7[%c0_29, %c128_30], %38 {strides = array<i32>} : memref<64x256xbf16, #tpu.memory_space<vmem>>, vector<64x128xbf16>,
    %c0_31 = arith.constant 0 : index
    %c128_32 = arith.constant 128 : index
    %40 = vector.load %arg7[%c0_31, %c128_32] : memref<64x256xbf16, #tpu.memory_space<vmem>>, vector<64x128xbf16>
    %cst_33 = arith.constant dense<0.000000e+00> : vector<64x128xf32>
    %41 = tpu.matmul %0, %40, %cst_33 {dimension_numbers = #tpu.dot_dimension_numbers<[1], [0], [0], [1], [0, 0, 1, 1], [], []>} : vector<64x64xbf16>, vector<64x128xbf16>, vector<64x128xf32> -> vector<64x128xf32>
    %42 = vector.broadcast %1 : vector<64x1xf32> to vector<64x128xf32>
    %43 = arith.mulf %41, %42 : vector<64x128xf32>
    %44 = arith.truncf %43 : vector<64x128xf32> to vector<64x128xbf16>
    %c0_34 = arith.constant 0 : index
    %c0_35 = arith.constant 0 : index
    %45 = vector.load %arg7[%c0_34, %c0_35] : memref<64x256xbf16, #tpu.memory_space<vmem>>, vector<64x128xbf16>
    tpu.vector_store %arg7[%c0_34, %c0_35], %44 {strides = array<i32>} : memref<64x256xbf16, #tpu.memory_space<vmem>>, vector<64x128xbf16>,
    %c0_36 = arith.constant 0 : index
    %c0_37 = arith.constant 0 : index
    %46 = vector.load %arg7[%c0_36, %c0_37] : memref<64x256xbf16, #tpu.memory_space<vmem>>, vector<64x256xbf16>
    %c2 = arith.constant 2 : index
    %c0_38 = arith.constant 0 : index
    %c0_39 = arith.constant 0 : index
    %47 = vector.load %arg4[%c2, %c0_38, %c0_39] : memref<3x256x128xbf16, #tpu.memory_space<vmem>>, vector<1x256x128xbf16>
    %48 = vector.shape_cast %47 : vector<1x256x128xbf16> to vector<256x128xbf16>
    %cst_40 = arith.constant dense<0.000000e+00> : vector<64x128xf32>
    %49 = tpu.matmul %46, %48, %cst_40 {dimension_numbers = #tpu.dot_dimension_numbers<[1], [0], [0], [1], [0, 0, 1, 1], [], []>} : vector<64x256xbf16>, vector<256x128xbf16>, vector<64x128xf32> -> vector<64x128xf32>
    %c2_41 = arith.constant 2 : index
    %c0_42 = arith.constant 0 : index
    %c0_43 = arith.constant 0 : index
    %50 = vector.load %arg5[%c2_41, %c0_42, %c0_43] : memref<3x1x128xf32, #tpu.memory_space<vmem>>, vector<1x1x128xf32>
    %51 = vector.shape_cast %50 : vector<1x1x128xf32> to vector<1x128xf32>
    %52 = vector.broadcast %51 : vector<1x128xf32> to vector<64x128xf32>
    %53 = arith.addf %49, %52 : vector<64x128xf32>
    %54 = tpu.iota {dimensions = array<i32: 1>} : vector<64x128xi32>
    %c8_i32 = arith.constant 8 : i32
    %55 = vector.broadcast %c8_i32 : i32 to vector<64x128xi32>
    %56 = arith.cmpi slt, %54, %55 : vector<64x128xi32>
    %cst_44 = arith.constant -1.000000e+30 : f32
    %57 = vector.broadcast %cst_44 : f32 to vector<64x128xf32>
    %58 = arith.select %56, %53, %57 : vector<64x128xi1>, vector<64x128xf32>
    %cst_45 = arith.constant dense<0xFF800000> : vector<64xf32>
    %59 = vector.multi_reduction <maximumf>, %58, %cst_45 [1] : vector<64x128xf32> to vector<64xf32>
    %60 = vector.shape_cast %59 : vector<64xf32> to vector<64x1xf32>
    %61 = vector.broadcast %60 : vector<64x1xf32> to vector<64x128xf32>
    %62 = arith.subf %58, %61 : vector<64x128xf32>
    %63 = math.exp %62 : vector<64x128xf32>
    %cst_46 = arith.constant dense<0.000000e+00> : vector<64xf32>
    %64 = vector.multi_reduction <add>, %63, %cst_46 [1] : vector<64x128xf32> to vector<64xf32>
    %65 = vector.shape_cast %64 : vector<64xf32> to vector<64x1xf32>
    %66 = math.log %65 : vector<64x1xf32>
    %67 = vector.broadcast %66 : vector<64x1xf32> to vector<64x128xf32>
    %68 = arith.subf %62, %67 : vector<64x128xf32>
    %c0_47 = arith.constant 0 : index
    %c0_48 = arith.constant 0 : index
    %69 = vector.load %arg6[%c0_47, %c0_48] : memref<64x128xf32, #tpu.memory_space<vmem>>, vector<64x128xf32>
    tpu.vector_store %arg6[%c0_47, %c0_48], %68 {strides = array<i32>} : memref<64x128xf32, #tpu.memory_space<vmem>>, vector<64x128xf32>,
    return
  }
  func.func @transform_0(%arg0: i32) -> (i32, i32) {
    %c0_i32 = arith.constant 0 : i32
    %c0_i32_0 = arith.constant 0 : i32
    %c0_i32_1 = arith.constant 0 : i32
    return %c0_i32, %c0_i32_0 : i32, i32
  }
  func.func @transform_1(%arg0: i32) -> (i32, i32) {
    %c0_i32 = arith.constant 0 : i32
    %c0_i32_0 = arith.constant 0 : i32
    %c0_i32_1 = arith.constant 0 : i32
    return %c0_i32, %c0_i32_0 : i32, i32
  }
  func.func @transform_2(%arg0: i32) -> (i32, i32) {
    %c0_i32 = arith.constant 0 : i32
    %c0_i32_0 = arith.constant 0 : i32
    %c0_i32_1 = arith.constant 0 : i32
    return %c0_i32, %c0_i32_0 : i32, i32
  }
  func.func @transform_3(%arg0: i32) -> (i32, i32, i32) {
    %c0_i32 = arith.constant 0 : i32
    %c0_i32_0 = arith.constant 0 : i32
    %c0_i32_1 = arith.constant 0 : i32
    %c0_i32_2 = arith.constant 0 : i32
    return %c0_i32, %c0_i32_0, %c0_i32_1 : i32, i32, i32
  }
  func.func @transform_4(%arg0: i32) -> (i32, i32, i32) {
    %c0_i32 = arith.constant 0 : i32
    %c0_i32_0 = arith.constant 0 : i32
    %c0_i32_1 = arith.constant 0 : i32
    %c0_i32_2 = arith.constant 0 : i32
    return %c0_i32, %c0_i32_0, %c0_i32_1 : i32, i32, i32
  }
  func.func @transform_5(%arg0: i32) -> (i32, i32) {
    %c0_i32 = arith.constant 0 : i32
    %c0_i32_0 = arith.constant 0 : i32
    %c0_i32_1 = arith.constant 0 : i32
    return %c0_i32, %c0_i32_0 : i32, i32
  }
}

</mosaic_0001>

<bundles_post_ra>
// kernel: tpu_custom_call.1
= control target key start
LH: loop header
LB: loop body
LE: loop exit
PB: predicated region body
PF: predicated region fallthrough
CT: control target
= control target key end

     0   :  { %10 = vsyncpa [#allocation4], 0  ;;  %s1919_s0 = inlined_call_operand.vmem [shape: bf16[64,64], index: 0, kind: input, shape index: {}]   ;;  %s1920_s1 = inlined_call_operand.vmem [shape: f32[64,1], index: 1, kind: input, shape index: {}]   ;;  %s1921_s2 = inlined_call_operand.vmem [shape: bf16[64,128], index: 2, kind: input, shape index: {}]   ;;  %s1922_s3 = inlined_call_operand.hbm [shape: bf16[3,256,128], index: 3, kind: input, shape index: {}]   ;;  %s1923_s4 = inlined_call_operand.vmem [shape: f32[3,1,128], index: 4, kind: input, shape index: {}]   ;;  %s1924_s5 = inlined_call_operand.hbm [shape: f32[64,128], index: 5, kind: output, shape index: {}]  }
   0x1   :  { %11 = vsyncpa [#allocation5], 0  ;;  %s22_s20 = sshll.u32 %s1922_s3, 4  ;;  %s1729_s21 = smov [#allocation3]   ;;  %s23_s20 = int_to_ptr.hbm [resolvable:$true] %s22_s20 }
   0x2   :  { %s24_s22 = sshll.u32 %s1729_s21, 4  ;;  %s1730_s23 = smov 64   ;;  %s25_s22 = int_to_ptr.vmem [resolvable:$true] %s24_s22 }
   0x3   :  { %s1731_s24 = smov 4  }
   0x4   :  { %30 = dma.hbm_to_vmem [thread:$0]  %s23_s20, 6144, %s25_s22, [#allocation4], %s1730_s23, %s1730_s23, %s1731_s24  }
   0x5   :  { %1725 = dma.done.wait [#allocation4], 6144  }
   0x6   :  { %1726 = vsyncadd [#allocation4], 4294961152  ;;  %v1732_v0 = vmov 0   ;;  %v1772_v1 = vld [vmem:[%s1921_s2 + $0x18] sm:$0xff]  ;;  %v46_v2 = vld [vmem:[%s1920_s1] sm:$0xff]  ;;  %vm106_vm0 = vcmask 523264  }
   0x7   :  { %1639 = vset.pattern.permute.xlu0 %v1732_v0  ;;  %1640 = vset.pattern.permute.xlu1 %v1732_v0  ;;  %v1782_v3 = vld [vmem:[%s1921_s2 + $0x10] sm:$0xff]  ;;  %v50_v5 = vld [vmem:[%s1920_s1 + $0x20] sm:$0xff]  ;;  %v1571_v6 = vld [vmem:[#allocation3 + $0x78] sm:$0xff]  ;;  %s1201_s11 = sshll.u32 %s1924_s5, 4  ;;  %s1734_s12 = smov 128   ;;  %s1202_s11 = int_to_ptr.hbm [resolvable:$true] %s1201_s11 }
   0x8   :  { %1641 = vset.pattern.permute.xlu2 %v1732_v0  ;;  %123 = vmatpush.bf16.msra.mxu0 %v1772_v1  ;;  %v48_v4 = vld [vmem:[%s1920_s1 + $0x10] sm:$0xff]  ;;  %v1563_v7 = vld [vmem:[#allocation3 + $0x38] sm:$0xff]  ;;  %v1553_v8 = vld [vmem:[%s1921_s2 + $0x8] sm:$0xff]  ;;  %s1735_s13 = smov 8  }
   0x9   :  { %1628 = vmatpush.bf16.msra.mxu3 %v1772_v1  ;;  %150 = vperm.xlu0 %1639, %v46_v2   ;;  %v47_v9 = vld [vmem:[%s1920_s1 + $0x8] sm:$0xff]  ;;  %v49_v10 = vld [vmem:[%s1920_s1 + $0x18] sm:$0xff]  ;;  %v1570_v11 = vld [vmem:[#allocation3 + $0x70] sm:$0xff] }
   0xa   :  { %160 = vperm.xlu1 %1640, %v48_v4   ;;  %170 = vperm.xlu2 %1641, %v50_v5   ;;  %v1552_v12 = vld [vmem:[%s1921_s2] sm:$0xff]  ;;  %v51_v13 = vld [vmem:[%s1920_s1 + $0x28] sm:$0xff]  ;;  %v1815_v15 = vld [vmem:[%s1919_s0 + $0x10] sm:$0xff] }
   0xb   :  { %280 = vmatpush.bf16.msra.mxu1 %v1571_v6  ;;  %357 = vmatpush.bf16.msra.mxu2 %v1563_v7  ;;  %v1810_v14 = vld [vmem:[%s1919_s0] sm:$0xff]  ;;  %v52_v16 = vld [vmem:[%s1920_s1 + $0x30] sm:$0xff]  ;;  %v53_v17 = vld [vmem:[%s1920_s1 + $0x38] sm:$0xff] }
   0xc   :  { %124 = vmatpush.bf16.msra.mxu0 %v1782_v3  ;;  %v1830_v18 = vld [vmem:[%s1919_s0 + $0x8] sm:$0xff]  ;;  %v1835_v19 = vld [vmem:[%s1919_s0 + $0x18] sm:$0xff]  ;;  %v1562_v20 = vld [vmem:[#allocation3 + $0x30] sm:$0xff] }
   0xd   :  { %1629 = vmatpush.bf16.msra.mxu3 %v1782_v3  ;;  %v1569_v21 = vld [vmem:[#allocation3 + $0x68] sm:$0xff]  ;;  %v1568_v23 = vld [vmem:[#allocation3 + $0x60] sm:$0xff]  ;;  %v1567_v25 = vld [vmem:[#allocation3 + $0x58] sm:$0xff] }
   0xe   :  { %v1561_v22 = vld [vmem:[#allocation3 + $0x28] sm:$0xff]  ;;  %v1560_v24 = vld [vmem:[#allocation3 + $0x20] sm:$0xff]  ;;  %v1559_v26 = vld [vmem:[#allocation3 + $0x18] sm:$0xff] }
   0xf   :  { %281 = vmatpush.bf16.msra.mxu1 %v1570_v11  ;;  %358 = vmatpush.bf16.msra.mxu2 %v1562_v20  ;;  %v1566_v27 = vld [vmem:[#allocation3 + $0x50] sm:$0xff]  ;;  %v1565_v29 = vld [vmem:[#allocation3 + $0x48] sm:$0xff]  ;;  %v1564_v31 = vld [vmem:[#allocation3 + $0x40] sm:$0xff] }
  0x10   :  { %125 = vmatpush.bf16.msra.mxu0 %v1553_v8  ;;  %v1558_v28 = vld [vmem:[#allocation3 + $0x10] sm:$0xff]  ;;  %v1557_v30 = vld [vmem:[#allocation3 + $0x8] sm:$0xff]  ;;  %v1556_v32 = vld [vmem:[#allocation3] sm:$0xff] }
  0x11   :  { %1630 = vmatpush.bf16.msra.mxu3 %v1553_v8  ;;  %155 = vperm.xlu0 %1639, %v47_v9   ;;  %v1642_v63 = vld [vmem:[%s1923_s4] ss:$0 sm:$0xff] }
  0x12   :  { %165 = vperm.xlu1 %1640, %v49_v10   ;;  %175 = vperm.xlu2 %1641, %v51_v13  }
  0x13   :  { %282 = vmatpush.bf16.msra.mxu1 %v1569_v21  ;;  %359 = vmatpush.bf16.msra.mxu2 %v1561_v22 }
  0x14   :  { %126 = vmatpush.bf16.msra.mxu0 %v1552_v12 }
  0x15   :  { %1631 = vmatpush.bf16.msra.mxu3 %v1552_v12 }
  0x17   :  { %1246 = vmatmul.msk.bf16.vlgmr.msra.gmra.mxu0 %vm106_vm0, %v1810_v14  ;;  %283 = vmatpush.bf16.msra.mxu1 %v1568_v23 }
  0x18   :  { %1248 = vmatmul.msk.bf16.vlgmr.msra.gmra.mxu3 %vm106_vm0, %v1815_v15  ;;  %360 = vmatpush.bf16.msra.mxu2 %v1560_v24 }
  0x19   :  { %180 = vperm.xlu0 %1639, %v52_v16  }
  0x1a   :  { %185 = vperm.xlu1 %1640, %v53_v17  }
  0x1b   :  { %284 = vmatpush.bf16.msra.mxu1 %v1567_v25 }
  0x1c   :  { %361 = vmatpush.bf16.msra.mxu2 %v1559_v26 }
  0x1f   :  { %285 = vmatpush.bf16.msra.mxu1 %v1566_v27 }
  0x20   :  { %362 = vmatpush.bf16.msra.mxu2 %v1558_v28 }
  0x23   :  { %286 = vmatpush.bf16.msra.mxu1 %v1565_v29 }
  0x24   :  { %363 = vmatpush.bf16.msra.mxu2 %v1557_v30 }
  0x27   :  { %1247 = vmatmul.msk.bf16.gmra.mxu0 %vm106_vm0, %v1830_v18  ;;  %287 = vmatpush.bf16.msra.mxu1 %v1564_v31 }
  0x28   :  { %1249 = vmatmul.msk.bf16.gmra.mxu3 %vm106_vm0, %v1835_v19  ;;  %364 = vmatpush.bf16.msra.mxu2 %v1556_v32 }
  0x2a   :  { %288 = vmatmul.bf16.vlgmr.msra.gmra.mxu1 %v1552_v12 }
  0x3a   :  { %293 = vmatmul.bf16.gmra.mxu1 %v1553_v8 }
  0x4a   :  { %298 = vmatmul.bf16.gmra.mxu1 %v1782_v3 }
  0x5a   :  { %303 = vmatmul.bf16.gmra.mxu1 %v1772_v1 }
  0x64   :  { %v1854_v47 = vpop.permute.xlu2 %170 }
  0x6c   :  { %v1857_v50 = vpop.permute.xlu2 %175 }
  0x7b   :  { %v1841_v33 = vpop.permute.xlu0 %150 }
  0x7c   :  { %v1848_v40 = vpop.permute.xlu1 %160 }
  0x83   :  { %v1843_v35 = vpop.permute.xlu0 %155 }
  0x84   :  { %v1850_v43 = vpop.permute.xlu1 %165 }
  0x8b   :  { %v1864_v58 = vpop.permute.xlu0 %180 }
  0x8c   :  { %v1861_v56 = vpop.permute.xlu1 %185 }
  0x94   :  { %v128_v34 = vpop.f32.mrf.mxu0 }
  0x95   :  { %v188_v37 = vmul.f32 %v1841_v33, %v128_v34 }
  0x9b   :  { %v138_v42 = vpop.f32.mrf.mxu3 }
  0x9c   :  { %v130_v36 = vpop.f32.mrf.mxu0  ;;  %v192_v51 = vmul.f32 %v1854_v47, %v138_v42 }
  0x9d   :  { %v189_v38 = vmul.f32 %v1843_v35, %v130_v36 }
  0x9f   :  { %v228_v39 = vpack.c.bf16 %v189_v38, %v188_v37 }
  0xa1   :  { %365 = vmatmul.bf16.vlgmr.msra.gmra.mxu2 %v228_v39 }
  0xa3   :  { %v140_v49 = vpop.f32.mrf.mxu3 }
  0xa4   :  { %v133_v41 = vpop.f32.mrf.mxu0  ;;  %v193_v52 = vmul.f32 %v1857_v50, %v140_v49 }
  0xa5   :  { %v190_v45 = vmul.f32 %v1848_v40, %v133_v41 }
  0xa6   :  { %v230_v54 = vpack.c.bf16 %v193_v52, %v192_v51 }
  0xa7   :  { %v289_v61 = vpop.f32.mrf.mxu1 }
  0xab   :  { %v143_v53 = vpop.f32.mrf.mxu3 }
  0xac   :  { %v135_v44 = vpop.f32.mrf.mxu0  ;;  %v194_v59 = vmul.f32 %v1864_v58, %v143_v53 }
  0xad   :  { %v191_v46 = vmul.f32 %v1850_v43, %v135_v44 }
  0xaf   :  { %v229_v48 = vpack.c.bf16 %v191_v46, %v190_v45  ;;  %v291_v62 = vpop.f32.mrf.mxu1 }
  0xb1   :  { %370 = vmatmul.bf16.gmra.mxu2 %v229_v48 }
  0xb3   :  { %v145_v55 = vpop.f32.mrf.mxu3 }
  0xb4   :  { %v195_v57 = vmul.f32 %v1861_v56, %v145_v55 }
  0xb6   :  { %v231_v60 = vpack.c.bf16 %v195_v57, %v194_v59 }
  0xb7   :  { %v294_v4 = vpop.f32.mrf.mxu1 }
  0xbf   :  { %v296_v11 = vpop.f32.mrf.mxu1 }
  0xc1   :  { %375 = vmatmul.bf16.gmra.mxu2 %v230_v54 }
  0xc7   :  { %v299_v23 = vpop.f32.mrf.mxu1 }
  0xcf   :  { %v301_v30 = vpop.f32.mrf.mxu1 }
  0xd1   :  { %380 = vmatmul.bf16.gmra.mxu2 %v231_v60 }
  0xd7   :  { %v304_v39 = vpop.f32.mrf.mxu1 }
  0xdf   :  { %v306_v49 = vpop.f32.mrf.mxu1 }
 0x124   :  { %v366_v0 = vpop.f32.mrf.mxu2 }
 0x125   :  { %v367_v1 = vadd.f32 %v366_v0, %v289_v61 }
 0x127   :  { %v390_v2 = vadd.f32 %v1642_v63, %v367_v1 }
 0x129   :  { %v398_v3 = vmax.f32 %v390_v2, 0.0 }
 0x12b   :  { %v406_v5 = vpack.c.bf16 %v398_v3, %v398_v3 }
 0x12c   :  { %v368_v6 = vpop.f32.mrf.mxu2 }
 0x12d   :  { %414 = vst [vmem:[#allocation2 + $0x4] sm:$0xf] %v406_v5  ;;  %v369_v7 = vadd.f32 %v368_v6, %v291_v62 }
 0x12f   :  { %v391_v8 = vadd.f32 %v1642_v63, %v369_v7  ;;  %v1598_v7 = vld [vmem:[#allocation3 + $0xf0] sm:$0xff] }
 0x131   :  { %v399_v9 = vmax.f32 %v391_v8, 0.0  ;;  %v1597_v8 = vld [vmem:[#allocation3 + $0xe8] sm:$0xff] }
 0x133   :  { %v407_v10 = vpack.c.bf16 %v399_v9, %v399_v9  ;;  %v1596_v9 = vld [vmem:[#allocation3 + $0xe0] sm:$0xff] }
 0x134   :  { %v371_v12 = vpop.f32.mrf.mxu2  ;;  %v1316_v5 = vld [vmem:[#allocation2 + $0x4] sm:$0xf] }
 0x135   :  { %415 = vst [vmem:[#allocation2 + $0xc] sm:$0xf] %v407_v10  ;;  %v372_v13 = vadd.f32 %v371_v12, %v294_v4  ;;  %v1595_v10 = vld [vmem:[#allocation3 + $0xd8] sm:$0xff]  ;;  %v1593_v12 = vld [vmem:[#allocation3 + $0xc8] sm:$0xff] }
 0x137   :  { %v392_v16 = vadd.f32 %v1642_v63, %v372_v13  ;;  %v1592_v13 = vld [vmem:[#allocation3 + $0xc0] sm:$0xff] }
 0x139   :  { %v400_v17 = vmax.f32 %v392_v16, 0.0 }
 0x13b   :  { %v408_v20 = vpack.c.bf16 %v400_v17, %v400_v17  ;;  %v1576_v17 = vld [vmem:[#allocation2 + $0x4] sm:$0xf] }
 0x13c   :  { %v373_v21 = vpop.f32.mrf.mxu2  ;;  %v1572_v4 = vld [vmem:[#allocation2 + $0x8] sm:$0xf0] }
 0x13d   :  { %416 = vst [vmem:[#allocation2 + $0x14] sm:$0xf] %v408_v20  ;;  %v374_v22 = vadd.f32 %v373_v21, %v296_v11  ;;  %v1317_v6 = vor.u32 %v1572_v4, %v1316_v5  ;;  %v1594_v11 = vld [vmem:[#allocation3 + $0xd0] sm:$0xff]  ;;  %v1339_v16 = vld [vmem:[#allocation2 + $0x8] sm:$0xf0] }
 0x13e   :  { %v1342_v20 = vor.u32 %v1576_v17, %v1339_v16 }
 0x13f   :  { %v393_v24 = vadd.f32 %v1642_v63, %v374_v22 }
 0x141   :  { %v401_v25 = vmax.f32 %v393_v24, 0.0  ;;  %v1591_v24 = vld [vmem:[#allocation3 + $0xb8] sm:$0xff] }
 0x142   :  { %689 = vmatpush.bf16.msrb.mxu0 %v1591_v24  ;;  %v1625_v24 = vld [vmem:[#allocation3 + $0x168] sm:$0xff] }
 0x143   :  { %v409_v26 = vpack.c.bf16 %v401_v25, %v401_v25  ;;  %v1590_v25 = vld [vmem:[#allocation3 + $0xb0] sm:$0xff] }
 0x144   :  { %v376_v27 = vpop.f32.mrf.mxu2  ;;  %v1320_v2 = vld [vmem:[#allocation2 + $0x14] sm:$0xf] }
 0x145   :  { %417 = vst [vmem:[#allocation2 + $0x1c] sm:$0xf] %v409_v26  ;;  %v377_v28 = vadd.f32 %v376_v27, %v299_v23  ;;  %v1578_v22 = vld [vmem:[#allocation2 + $0x14] sm:$0xf] }
 0x146   :  { %690 = vmatpush.bf16.msrb.mxu0 %v1590_v25  ;;  %v1624_v25 = vld [vmem:[#allocation3 + $0x160] sm:$0xff] }
 0x147   :  { %v394_v29 = vadd.f32 %v1642_v63, %v377_v28 }
 0x149   :  { %v402_v31 = vmax.f32 %v394_v29, 0.0  ;;  %v1589_v29 = vld [vmem:[#allocation3 + $0xa8] sm:$0xff] }
 0x14a   :  { %691 = vmatpush.bf16.msrb.mxu0 %v1589_v29 }
 0x14b   :  { %v410_v32 = vpack.c.bf16 %v402_v31, %v402_v31  ;;  %v1587_v31 = vld [vmem:[#allocation3 + $0x98] sm:$0xff] }
 0x14c   :  { %v378_v34 = vpop.f32.mrf.mxu2  ;;  %v1573_v1 = vld [vmem:[#allocation2 + $0x18] sm:$0xf0] }
 0x14d   :  { %418 = vst [vmem:[#allocation2 + $0x24] sm:$0xf] %v410_v32  ;;  %v379_v36 = vadd.f32 %v378_v34, %v301_v30  ;;  %v1321_v3 = vor.u32 %v1573_v1, %v1320_v2  ;;  %v1347_v21 = vld [vmem:[#allocation2 + $0x18] sm:$0xf0]  ;;  %v1588_v30 = vld [vmem:[#allocation3 + $0xa0] sm:$0xff] }
 0x14e   :  { %v1350_v23 = vor.u32 %v1578_v22, %v1347_v21  ;;  %692 = vmatpush.bf16.msrb.mxu0 %v1588_v30  ;;  %v1627_v22 = vld [vmem:[#allocation3 + $0x178] sm:$0xff]  ;;  %v1620_v30 = vld [vmem:[#allocation3 + $0x140] sm:$0xff] }
 0x14f   :  { %v395_v37 = vadd.f32 %v1642_v63, %v379_v36  ;;  %v1586_v36 = vld [vmem:[#allocation3 + $0x90] sm:$0xff] }
 0x151   :  { %v403_v38 = vmax.f32 %v395_v37, 0.0 }
 0x152   :  { %693 = vmatpush.bf16.msrb.mxu0 %v1587_v31  ;;  %v1643_v31 = vld [vmem:[%s1923_s4 + $0x1] ss:$0 sm:$0xff] }
 0x153   :  { %v411_v41 = vpack.c.bf16 %v403_v38, %v403_v38  ;;  %v1585_v38 = vld [vmem:[#allocation3 + $0x88] sm:$0xff] }
 0x154   :  { %v381_v42 = vpop.f32.mrf.mxu2  ;;  %v1324_v62 = vld [vmem:[#allocation2 + $0x24] sm:$0xf] }
 0x155   :  { %419 = vst [vmem:[#allocation2 + $0x2c] sm:$0xf] %v411_v41  ;;  %v382_v44 = vadd.f32 %v381_v42, %v304_v39  ;;  %v1580_v27 = vld [vmem:[#allocation2 + $0x24] sm:$0xf] }
 0x156   :  { %694 = vmatpush.bf16.msrb.mxu0 %v1586_v36  ;;  %v1584_v39 = vld [vmem:[#allocation3 + $0x80] sm:$0xff] }
 0x157   :  { %v396_v45 = vadd.f32 %v1642_v63, %v382_v44 }
 0x159   :  { %v404_v46 = vmax.f32 %v396_v45, 0.0 }
 0x15a   :  { %695 = vmatpush.bf16.msrb.mxu0 %v1585_v38 }
 0x15b   :  { %v412_v48 = vpack.c.bf16 %v404_v46, %v404_v46 }
 0x15c   :  { %v383_v51 = vpop.f32.mrf.mxu2  ;;  %v1574_v61 = vld [vmem:[#allocation2 + $0x28] sm:$0xf0] }
 0x15d   :  { %420 = vst [vmem:[#allocation2 + $0x34] sm:$0xf] %v412_v48  ;;  %v384_v52 = vadd.f32 %v383_v51, %v306_v49  ;;  %v1325_v0 = vor.u32 %v1574_v61, %v1324_v62  ;;  %v1355_v26 = vld [vmem:[#allocation2 + $0x28] sm:$0xf0] }
 0x15e   :  { %v1358_v28 = vor.u32 %v1580_v27, %v1355_v26  ;;  %696 = vmatpush.bf16.msrb.mxu0 %v1584_v39  ;;  %v1623_v26 = vld [vmem:[#allocation3 + $0x158] sm:$0xff]  ;;  %v1622_v27 = vld [vmem:[#allocation3 + $0x150] sm:$0xff] }
 0x15f   :  { %v397_v53 = vadd.f32 %v1642_v63, %v384_v52  ;;  %v1599_v63 = vld [vmem:[#allocation3 + $0xf8] sm:$0xff] }
 0x161   :  { %v405_v54 = vmax.f32 %v397_v53, 0.0 }
 0x162   :  { %1067 = vmatpush.bf16.msra.mxu0 %v1627_v22 }
 0x163   :  { %v413_v55 = vpack.c.bf16 %v405_v54, %v405_v54 }
 0x164   :  { %v1328_v57 = vld [vmem:[#allocation2 + $0x34] sm:$0xf] }
 0x165   :  { %421 = vst [vmem:[#allocation2 + $0x3c] sm:$0xf] %v413_v55  ;;  %v1582_v34 = vld [vmem:[#allocation2 + $0x34] sm:$0xf] }
 0x16c   :  { %v1575_v59 = vld [vmem:[#allocation2 + $0x38] sm:$0xf0] }
 0x16d   :  { %v1329_v60 = vor.u32 %v1575_v59, %v1328_v57  ;;  %v1363_v32 = vld [vmem:[#allocation2 + $0x38] sm:$0xf0] }
 0x16e   :  { %v1366_v37 = vor.u32 %v1582_v34, %v1363_v32 }
 0x16f   :  { %458 = vmatpush.bf16.msrb.mxu3 %v1329_v60 }
 0x173   :  { %459 = vmatpush.bf16.msrb.mxu3 %v1325_v0 }
 0x177   :  { %460 = vmatpush.bf16.msrb.mxu3 %v1321_v3 }
 0x17b   :  { %461 = vmatpush.bf16.msrb.mxu3 %v1317_v6 }
 0x17e   :  { %1330 = vmatmul.msk.bf16.vlgmr.msrb.gmra.mxu3 %vm106_vm0, %v1810_v14 }
 0x17f   :  { %718 = vmatpush.bf16.msra.mxu3 %v1599_v63 }
 0x183   :  { %719 = vmatpush.bf16.msra.mxu3 %v1598_v7 }
 0x187   :  { %720 = vmatpush.bf16.msra.mxu3 %v1597_v8 }
 0x18b   :  { %721 = vmatpush.bf16.msra.mxu3 %v1596_v9 }
 0x18e   :  { %1331 = vmatmul.msk.bf16.gmra.mxu3 %vm106_vm0, %v1830_v18 }
 0x18f   :  { %722 = vmatpush.bf16.msra.mxu3 %v1595_v10 }
 0x193   :  { %723 = vmatpush.bf16.msra.mxu3 %v1594_v11 }
 0x197   :  { %724 = vmatpush.bf16.msra.mxu3 %v1593_v12 }
 0x19b   :  { %725 = vmatpush.bf16.msra.mxu3 %v1592_v13 }
 0x19e   :  { %1332 = vmatmul.msk.bf16.gmra.mxu3 %vm106_vm0, %v1815_v15 }
 0x1ae   :  { %1333 = vmatmul.msk.bf16.gmra.mxu3 %vm106_vm0, %v1835_v19 }
 0x1be   :  { %726 = vmatmul.bf16.vlgmr.msra.gmra.mxu3 %v1342_v20 }
 0x1ce   :  { %731 = vmatmul.bf16.gmra.mxu3 %v1350_v23  ;;  %v1626_v23 = vld [vmem:[#allocation3 + $0x170] sm:$0xff] }
 0x1cf   :  { %1068 = vmatpush.bf16.msra.mxu0 %v1626_v23 }
 0x1d3   :  { %1069 = vmatpush.bf16.msra.mxu0 %v1625_v24 }
 0x1d7   :  { %1070 = vmatpush.bf16.msra.mxu0 %v1624_v25 }
 0x1db   :  { %1071 = vmatpush.bf16.msra.mxu0 %v1623_v26 }
 0x1de   :  { %736 = vmatmul.bf16.gmra.mxu3 %v1358_v28  ;;  %v1621_v28 = vld [vmem:[#allocation3 + $0x148] sm:$0xff] }
 0x1df   :  { %1072 = vmatpush.bf16.msra.mxu0 %v1622_v27 }
 0x1e3   :  { %1073 = vmatpush.bf16.msra.mxu0 %v1621_v28 }
 0x1e7   :  { %1074 = vmatpush.bf16.msra.mxu0 %v1620_v30 }
 0x1ee   :  { %741 = vmatmul.bf16.gmra.mxu3 %v1366_v37 }
 0x201   :  { %v463_v41 = vpop.f32.mrf.mxu3 }
 0x202   :  { %v483_v42 = vmul.f32 %v463_v41, %v1841_v33 }
 0x204   :  { %v491_v44 = vpack.c.bf16 %v483_v42, %v483_v42 }
 0x206   :  { %499 = vst [vmem:[#allocation2] sm:$0xf] %v491_v44 }
 0x209   :  { %v465_v45 = vpop.f32.mrf.mxu3 }
 0x20a   :  { %v484_v46 = vmul.f32 %v465_v45, %v1843_v35 }
 0x20c   :  { %v492_v48 = vpack.c.bf16 %v484_v46, %v484_v46 }
 0x20d   :  { %v1337_v53 = vld [vmem:[#allocation2] sm:$0xf] }
 0x20e   :  { %500 = vst [vmem:[#allocation2 + $0x8] sm:$0xf] %v492_v48 }
 0x211   :  { %v468_v49 = vpop.f32.mrf.mxu3 }
 0x212   :  { %v485_v51 = vmul.f32 %v468_v49, %v1848_v40 }
 0x214   :  { %v493_v52 = vpack.c.bf16 %v485_v51, %v485_v51 }
 0x215   :  { %v1577_v54 = vld [vmem:[#allocation2 + $0x4] sm:$0xf0] }
 0x216   :  { %501 = vst [vmem:[#allocation2 + $0x10] sm:$0xf] %v493_v52  ;;  %v1338_v55 = vor.u32 %v1577_v54, %v1337_v53 }
 0x218   :  { %697 = vmatmul.bf16.vlgmr.msrb.gmra.mxu0 %v1338_v55 }
 0x219   :  { %v470_v57 = vpop.f32.mrf.mxu3 }
 0x21a   :  { %v486_v59 = vmul.f32 %v470_v57, %v1850_v43 }
 0x21c   :  { %v494_v60 = vpack.c.bf16 %v486_v59, %v486_v59 }
 0x21d   :  { %v1345_v1 = vld [vmem:[#allocation2 + $0x10] sm:$0xf] }
 0x21e   :  { %502 = vst [vmem:[#allocation2 + $0x18] sm:$0xf] %v494_v60 }
 0x221   :  { %v473_v61 = vpop.f32.mrf.mxu3 }
 0x222   :  { %v487_v62 = vmul.f32 %v473_v61, %v1854_v47 }
 0x224   :  { %v495_v0 = vpack.c.bf16 %v487_v62, %v487_v62 }
 0x225   :  { %v1579_v2 = vld [vmem:[#allocation2 + $0x14] sm:$0xf0] }
 0x226   :  { %503 = vst [vmem:[#allocation2 + $0x20] sm:$0xf] %v495_v0  ;;  %v1346_v3 = vor.u32 %v1579_v2, %v1345_v1 }
 0x228   :  { %702 = vmatmul.bf16.gmra.mxu0 %v1346_v3 }
 0x229   :  { %v475_v4 = vpop.f32.mrf.mxu3 }
 0x22a   :  { %v488_v5 = vmul.f32 %v475_v4, %v1857_v50 }
 0x22c   :  { %v496_v6 = vpack.c.bf16 %v488_v5, %v488_v5 }
 0x22d   :  { %v1353_v9 = vld [vmem:[#allocation2 + $0x20] sm:$0xf] }
 0x22e   :  { %504 = vst [vmem:[#allocation2 + $0x28] sm:$0xf] %v496_v6 }
 0x231   :  { %v478_v63 = vpop.f32.mrf.mxu3 }
 0x232   :  { %v489_v7 = vmul.f32 %v478_v63, %v1864_v58 }
 0x234   :  { %v497_v8 = vpack.c.bf16 %v489_v7, %v489_v7 }
 0x235   :  { %v1581_v10 = vld [vmem:[#allocation2 + $0x24] sm:$0xf0] }
 0x236   :  { %505 = vst [vmem:[#allocation2 + $0x30] sm:$0xf] %v497_v8  ;;  %v1354_v11 = vor.u32 %v1581_v10, %v1353_v9 }
 0x238   :  { %707 = vmatmul.bf16.gmra.mxu0 %v1354_v11 }
 0x239   :  { %v480_v12 = vpop.f32.mrf.mxu3 }
 0x23a   :  { %v490_v13 = vmul.f32 %v480_v12, %v1861_v56 }
 0x23c   :  { %v498_v16 = vpack.c.bf16 %v490_v13, %v490_v13 }
 0x23d   :  { %v1361_v17 = vld [vmem:[#allocation2 + $0x30] sm:$0xf] }
 0x23e   :  { %506 = vst [vmem:[#allocation2 + $0x38] sm:$0xf] %v498_v16 }
 0x241   :  { %v727_v29 = vpop.f32.mrf.mxu3 }
 0x245   :  { %v1583_v20 = vld [vmem:[#allocation2 + $0x34] sm:$0xf0] }
 0x246   :  { %v1362_v21 = vor.u32 %v1583_v20, %v1361_v17 }
 0x248   :  { %712 = vmatmul.bf16.gmra.mxu0 %v1362_v21 }
 0x249   :  { %v729_v32 = vpop.f32.mrf.mxu3 }
 0x251   :  { %v732_v41 = vpop.f32.mrf.mxu3 }
 0x259   :  { %v734_v52 = vpop.f32.mrf.mxu3 }
 0x261   :  { %v737_v1 = vpop.f32.mrf.mxu3 }
 0x269   :  { %v739_v7 = vpop.f32.mrf.mxu3 }
 0x271   :  { %v742_v21 = vpop.f32.mrf.mxu3 }
 0x295   :  { %v698_v34 = vpop.f32.mrf.mxu0 }
 0x296   :  { %v699_v36 = vadd.f32 %v1643_v31, %v698_v34  ;;  %v744_v34 = vpop.f32.mrf.mxu3 }
 0x298   :  { %v728_v37 = vadd.f32 %v727_v29, %v699_v36 }
 0x29a   :  { %v747_v38 = vmax.f32 %v728_v37, 0.0 }
 0x29c   :  { %v755_v39 = vpack.c.bf16 %v747_v38, %v747_v38 }
 0x29d   :  { %v700_v42 = vpop.f32.mrf.mxu0 }
 0x29e   :  { %763 = vst [vmem:[#allocation2 + $0x4] sm:$0xf] %v755_v39  ;;  %v701_v44 = vadd.f32 %v1643_v31, %v700_v42 }
 0x2a0   :  { %v730_v45 = vadd.f32 %v729_v32, %v701_v44 }
 0x2a2   :  { %v748_v46 = vmax.f32 %v730_v45, 0.0 }
 0x2a4   :  { %v756_v48 = vpack.c.bf16 %v748_v46, %v748_v46 }
 0x2a5   :  { %v703_v49 = vpop.f32.mrf.mxu0  ;;  %v1604_v59 = vld [vmem:[#allocation2 + $0x4] sm:$0xf] }
 0x2a6   :  { %764 = vst [vmem:[#allocation2 + $0xc] sm:$0xf] %v756_v48  ;;  %v704_v51 = vadd.f32 %v1643_v31, %v703_v49 }
 0x2a8   :  { %v733_v53 = vadd.f32 %v732_v41, %v704_v51 }
 0x2aa   :  { %v749_v54 = vmax.f32 %v733_v53, 0.0 }
 0x2ac   :  { %v757_v55 = vpack.c.bf16 %v749_v54, %v749_v54 }
 0x2ad   :  { %v705_v57 = vpop.f32.mrf.mxu0  ;;  %v1456_v60 = vld [vmem:[#allocation2 + $0x8] sm:$0xf0] }
 0x2ae   :  { %765 = vst [vmem:[#allocation2 + $0x14] sm:$0xf] %v757_v55  ;;  %v706_v61 = vadd.f32 %v1643_v31, %v705_v57  ;;  %v1459_v62 = vor.u32 %v1604_v59, %v1456_v60  ;;  %v1600_v54 = vld [vmem:[#allocation2 + $0x8] sm:$0xf0]  ;;  %v1433_v55 = vld [vmem:[#allocation2 + $0x4] sm:$0xf] }
 0x2af   :  { %v1434_v57 = vor.u32 %v1600_v54, %v1433_v55  ;;  %v1619_v59 = vld [vmem:[#allocation3 + $0x138] sm:$0xff]  ;;  %v1618_v60 = vld [vmem:[#allocation3 + $0x130] sm:$0xff] }
 0x2b0   :  { %v735_v0 = vadd.f32 %v734_v52, %v706_v61  ;;  %1075 = vmatmul.bf16.vlgmr.msra.gmra.mxu0 %v1459_v62  ;;  %1038 = vmatpush.bf16.msrb.mxu2 %v1619_v59  ;;  %v1617_v61 = vld [vmem:[#allocation3 + $0x128] sm:$0xff]  ;;  %v1616_v62 = vld [vmem:[#allocation3 + $0x120] sm:$0xff] }
 0x2b2   :  { %v750_v2 = vmax.f32 %v735_v0, 0.0  ;;  %v1615_v0 = vld [vmem:[#allocation3 + $0x118] sm:$0xff] }
 0x2b4   :  { %v758_v3 = vpack.c.bf16 %v750_v2, %v750_v2  ;;  %1039 = vmatpush.bf16.msrb.mxu2 %v1618_v60 }
 0x2b5   :  { %v708_v4 = vpop.f32.mrf.mxu0  ;;  %v1606_v10 = vld [vmem:[#allocation2 + $0x14] sm:$0xf] }
 0x2b6   :  { %766 = vst [vmem:[#allocation2 + $0x1c] sm:$0xf] %v758_v3  ;;  %v709_v5 = vadd.f32 %v1643_v31, %v708_v4 }
 0x2b8   :  { %v738_v6 = vadd.f32 %v737_v1, %v709_v5  ;;  %1040 = vmatpush.bf16.msrb.mxu2 %v1617_v61  ;;  %v1613_v1 = vld [vmem:[#allocation3 + $0x108] sm:$0xff] }
 0x2ba   :  { %v751_v63 = vmax.f32 %v738_v6, 0.0 }
 0x2bc   :  { %v759_v8 = vpack.c.bf16 %v751_v63, %v751_v63  ;;  %1041 = vmatpush.bf16.msrb.mxu2 %v1616_v62 }
 0x2bd   :  { %v710_v9 = vpop.f32.mrf.mxu0  ;;  %v1464_v11 = vld [vmem:[#allocation2 + $0x18] sm:$0xf0] }
 0x2be   :  { %767 = vst [vmem:[#allocation2 + $0x24] sm:$0xf] %v759_v8  ;;  %v711_v12 = vadd.f32 %v1643_v31, %v710_v9  ;;  %v1467_v13 = vor.u32 %v1606_v10, %v1464_v11  ;;  %v1601_v52 = vld [vmem:[#allocation2 + $0x18] sm:$0xf0] }
 0x2c0   :  { %v740_v16 = vadd.f32 %v739_v7, %v711_v12  ;;  %1080 = vmatmul.bf16.gmra.mxu0 %v1467_v13  ;;  %1042 = vmatpush.bf16.msrb.mxu2 %v1615_v0 }
 0x2c2   :  { %v752_v17 = vmax.f32 %v740_v16, 0.0 }
 0x2c4   :  { %v760_v20 = vpack.c.bf16 %v752_v17, %v752_v17 }
 0x2c5   :  { %v713_v22 = vpop.f32.mrf.mxu0  ;;  %v1608_v28 = vld [vmem:[#allocation2 + $0x24] sm:$0xf] }
 0x2c6   :  { %768 = vst [vmem:[#allocation2 + $0x2c] sm:$0xf] %v760_v20  ;;  %v714_v23 = vadd.f32 %v1643_v31, %v713_v22  ;;  %v1441_v49 = vld [vmem:[#allocation2 + $0x24] sm:$0xf] }
 0x2c8   :  { %v743_v24 = vadd.f32 %v742_v21, %v714_v23 }
 0x2ca   :  { %v753_v25 = vmax.f32 %v743_v24, 0.0 }
 0x2cc   :  { %v761_v26 = vpack.c.bf16 %v753_v25, %v753_v25 }
 0x2cd   :  { %v715_v27 = vpop.f32.mrf.mxu0  ;;  %v1472_v29 = vld [vmem:[#allocation2 + $0x28] sm:$0xf0] }
 0x2ce   :  { %769 = vst [vmem:[#allocation2 + $0x34] sm:$0xf] %v761_v26  ;;  %v716_v30 = vadd.f32 %v1643_v31, %v715_v27  ;;  %v1475_v32 = vor.u32 %v1608_v28, %v1472_v29  ;;  %v1602_v48 = vld [vmem:[#allocation2 + $0x28] sm:$0xf0]  ;;  %v1437_v31 = vld [vmem:[#allocation2 + $0x14] sm:$0xf] }
 0x2cf   :  { %v1442_v51 = vor.u32 %v1602_v48, %v1441_v49  ;;  %v1438_v53 = vor.u32 %v1601_v52, %v1437_v31 }
 0x2d0   :  { %v745_v36 = vadd.f32 %v744_v34, %v716_v30  ;;  %1085 = vmatmul.bf16.gmra.mxu0 %v1475_v32 }
 0x2d2   :  { %v754_v37 = vmax.f32 %v745_v36, 0.0 }
 0x2d4   :  { %v762_v38 = vpack.c.bf16 %v754_v37, %v754_v37  ;;  %v1096_v37 = vlaneseq }
 0x2d5   :  { %v1445_v39 = vld [vmem:[#allocation2 + $0x34] sm:$0xf] }
 0x2d6   :  { %770 = vst [vmem:[#allocation2 + $0x3c] sm:$0xf] %v762_v38  ;;  %v1610_v42 = vld [vmem:[#allocation2 + $0x34] sm:$0xf] }
 0x2dd   :  { %v1603_v41 = vld [vmem:[#allocation2 + $0x38] sm:$0xf0] }
 0x2de   :  { %v1480_v44 = vld [vmem:[#allocation2 + $0x38] sm:$0xf0]  ;;  %v1446_v45 = vor.u32 %v1603_v41, %v1445_v39  ;;  %v1097_v39 = vand.u32 127, %v1096_v37 }
 0x2df   :  { %v1483_v46 = vor.u32 %v1610_v42, %v1480_v44 }
 0x2e0   :  { %807 = vmatpush.bf16.msrb.mxu1 %v1446_v45  ;;  %vm1098_vm1 = vcmp.lt.s32.totalorder %v1097_v39, 8 }
 0x2e1   :  { %1090 = vmatmul.bf16.gmra.mxu0 %v1483_v46 }
 0x2e4   :  { %808 = vmatpush.bf16.msrb.mxu1 %v1442_v51 }
 0x2e8   :  { %809 = vmatpush.bf16.msrb.mxu1 %v1438_v53 }
 0x2ec   :  { %810 = vmatpush.bf16.msrb.mxu1 %v1434_v57 }
 0x2ef   :  { %1447 = vmatmul.msk.bf16.vlgmr.msrb.gmra.mxu1 %vm106_vm0, %v1810_v14  ;;  %v1614_v14 = vld [vmem:[#allocation3 + $0x110] sm:$0xff] }
 0x2f0   :  { %1043 = vmatpush.bf16.msrb.mxu2 %v1614_v14 }
 0x2f4   :  { %1044 = vmatpush.bf16.msrb.mxu2 %v1613_v1 }
 0x2ff   :  { %1448 = vmatmul.msk.bf16.gmra.mxu1 %vm106_vm0, %v1830_v18  ;;  %v1612_v18 = vld [vmem:[#allocation3 + $0x100] sm:$0xff] }
 0x300   :  { %1045 = vmatpush.bf16.msrb.mxu2 %v1612_v18 }
 0x30f   :  { %1449 = vmatmul.msk.bf16.gmra.mxu1 %vm106_vm0, %v1815_v15 }
 0x31f   :  { %1450 = vmatmul.msk.bf16.gmra.mxu1 %vm106_vm0, %v1835_v19 }
 0x36c   :  { %v812_v15 = vpop.f32.mrf.mxu1 }
 0x36d   :  { %v832_v2 = vmul.f32 %v812_v15, %v1841_v33 }
 0x36f   :  { %v840_v19 = vpack.c.bf16 %v832_v2, %v832_v2 }
 0x371   :  { %848 = vst [vmem:[#allocation2] sm:$0xf] %v840_v19 }
 0x374   :  { %v814_v3 = vpop.f32.mrf.mxu1 }
 0x375   :  { %v833_v4 = vmul.f32 %v814_v3, %v1843_v35 }
 0x377   :  { %v841_v5 = vpack.c.bf16 %v833_v4, %v833_v4 }
 0x378   :  { %v1454_v8 = vld [vmem:[#allocation2] sm:$0xf] }
 0x379   :  { %849 = vst [vmem:[#allocation2 + $0x8] sm:$0xf] %v841_v5 }
 0x37c   :  { %v817_v6 = vpop.f32.mrf.mxu1 }
 0x37d   :  { %v834_v63 = vmul.f32 %v817_v6, %v1848_v40 }
 0x37f   :  { %v842_v7 = vpack.c.bf16 %v834_v63, %v834_v63 }
 0x380   :  { %v1605_v9 = vld [vmem:[#allocation2 + $0x4] sm:$0xf0] }
 0x381   :  { %850 = vst [vmem:[#allocation2 + $0x10] sm:$0xf] %v842_v7  ;;  %v1455_v10 = vor.u32 %v1605_v9, %v1454_v8 }
 0x383   :  { %1046 = vmatmul.bf16.vlgmr.msrb.gmra.mxu2 %v1455_v10 }
 0x384   :  { %v819_v11 = vpop.f32.mrf.mxu1 }
 0x385   :  { %v835_v12 = vmul.f32 %v819_v11, %v1850_v43 }
 0x387   :  { %v843_v33 = vpack.c.bf16 %v835_v12, %v835_v12 }
 0x388   :  { %v1462_v17 = vld [vmem:[#allocation2 + $0x10] sm:$0xf] }
 0x389   :  { %851 = vst [vmem:[#allocation2 + $0x18] sm:$0xf] %v843_v33 }
 0x38c   :  { %v822_v13 = vpop.f32.mrf.mxu1 }
 0x38d   :  { %v836_v16 = vmul.f32 %v822_v13, %v1854_v47 }
 0x38f   :  { %v844_v35 = vpack.c.bf16 %v836_v16, %v836_v16 }
 0x390   :  { %v1607_v20 = vld [vmem:[#allocation2 + $0x14] sm:$0xf0] }
 0x391   :  { %852 = vst [vmem:[#allocation2 + $0x20] sm:$0xf] %v844_v35  ;;  %v1463_v21 = vor.u32 %v1607_v20, %v1462_v17 }
 0x393   :  { %1051 = vmatmul.bf16.gmra.mxu2 %v1463_v21 }
 0x394   :  { %v824_v40 = vpop.f32.mrf.mxu1 }
 0x395   :  { %v837_v22 = vmul.f32 %v824_v40, %v1857_v50  ;;  %v1076_v50 = vpop.f32.mrf.mxu0 }
 0x397   :  { %v845_v23 = vpack.c.bf16 %v837_v22, %v837_v22 }
 0x398   :  { %v1470_v26 = vld [vmem:[#allocation2 + $0x20] sm:$0xf] }
 0x399   :  { %853 = vst [vmem:[#allocation2 + $0x28] sm:$0xf] %v845_v23 }
 0x39c   :  { %v827_v24 = vpop.f32.mrf.mxu1 }
 0x39d   :  { %v838_v25 = vmul.f32 %v827_v24, %v1864_v58  ;;  %v1644_v58 = vld [vmem:[%s1923_s4 + $0x2] ss:$0 sm:$0xff]  ;;  %v1078_v38 = vpop.f32.mrf.mxu0  ;;  %s1733_s4 = smov [#allocation6]  }
 0x39e   :  { %s1199_s8 = sshll.u32 %s1733_s4, 4  ;;  %s1200_s8 = int_to_ptr.vmem [resolvable:$true] %s1199_s8 }
 0x39f   :  { %v846_v43 = vpack.c.bf16 %v838_v25, %v838_v25 }
 0x3a0   :  { %v1609_v27 = vld [vmem:[#allocation2 + $0x24] sm:$0xf0] }
 0x3a1   :  { %854 = vst [vmem:[#allocation2 + $0x30] sm:$0xf] %v846_v43  ;;  %v1471_v28 = vor.u32 %v1609_v27, %v1470_v26 }
 0x3a3   :  { %1056 = vmatmul.bf16.gmra.mxu2 %v1471_v28 }
 0x3a4   :  { %v829_v47 = vpop.f32.mrf.mxu1 }
 0x3a5   :  { %v839_v29 = vmul.f32 %v829_v47, %v1861_v56  ;;  %v1081_v45 = vpop.f32.mrf.mxu0 }
 0x3a7   :  { %v847_v30 = vpack.c.bf16 %v839_v29, %v839_v29 }
 0x3a8   :  { %v1478_v32 = vld [vmem:[#allocation2 + $0x30] sm:$0xf] }
 0x3a9   :  { %855 = vst [vmem:[#allocation2 + $0x38] sm:$0xf] %v847_v30 }
 0x3ad   :  { %v1083_v53 = vpop.f32.mrf.mxu0 }
 0x3b0   :  { %v1611_v34 = vld [vmem:[#allocation2 + $0x34] sm:$0xf0] }
 0x3b1   :  { %v1479_v36 = vor.u32 %v1611_v34, %v1478_v32 }
 0x3b3   :  { %1061 = vmatmul.bf16.gmra.mxu2 %v1479_v36 }
 0x3b5   :  { %v1086_v61 = vpop.f32.mrf.mxu0 }
 0x3bd   :  { %v1088_v15 = vpop.f32.mrf.mxu0 }
 0x3c5   :  { %v1091_v5 = vpop.f32.mrf.mxu0 }
 0x3cd   :  { %v1093_v11 = vpop.f32.mrf.mxu0 }
 0x406   :  { %v1047_v41 = vpop.f32.mrf.mxu2 }
 0x407   :  { %v1048_v42 = vadd.f32 %v1644_v58, %v1047_v41 }
 0x409   :  { %v1077_v44 = vadd.f32 %v1076_v50, %v1048_v42 }
 0x40b   :  { %v1099_v56 = vsel %vm1098_vm1, %v1077_v44, -1e+30 }
 0x40c   :  { %1107 = vmax.xlane.f32.xlu2 %v1099_v56 }
 0x40e   :  { %v1049_v46 = vpop.f32.mrf.mxu2 }
 0x40f   :  { %v1050_v48 = vadd.f32 %v1644_v58, %v1049_v46 }
 0x411   :  { %v1079_v49 = vadd.f32 %v1078_v38, %v1050_v48 }
 0x413   :  { %v1100_v51 = vsel %vm1098_vm1, %v1079_v49, -1e+30 }
 0x414   :  { %1109 = vmax.xlane.f32.xlu0 %v1100_v51 }
 0x416   :  { %v1052_v52 = vpop.f32.mrf.mxu2 }
 0x417   :  { %v1053_v31 = vadd.f32 %v1644_v58, %v1052_v52 }
 0x419   :  { %v1082_v54 = vadd.f32 %v1081_v45, %v1053_v31 }
 0x41b   :  { %v1101_v55 = vsel %vm1098_vm1, %v1082_v54, -1e+30 }
 0x41c   :  { %1111 = vmax.xlane.f32.xlu1 %v1101_v55 }
 0x41e   :  { %v1054_v57 = vpop.f32.mrf.mxu2 }
 0x41f   :  { %v1055_v59 = vadd.f32 %v1644_v58, %v1054_v57 }
 0x421   :  { %v1084_v60 = vadd.f32 %v1083_v53, %v1055_v59 }
 0x423   :  { %v1102_v62 = vsel %vm1098_vm1, %v1084_v60, -1e+30 }
 0x424   :  { %1113 = vmax.xlane.f32.xlu2 %v1102_v62 }
 0x426   :  { %v1057_v0 = vpop.f32.mrf.mxu2 }
 0x427   :  { %v1058_v14 = vadd.f32 %v1644_v58, %v1057_v0 }
 0x429   :  { %v1087_v1 = vadd.f32 %v1086_v61, %v1058_v14 }
 0x42b   :  { %v1103_v18 = vsel %vm1098_vm1, %v1087_v1, -1e+30 }
 0x42c   :  { %1115 = vmax.xlane.f32.xlu2 %v1103_v18 }
 0x42e   :  { %v1059_v2 = vpop.f32.mrf.mxu2 }
 0x42f   :  { %v1060_v19 = vadd.f32 %v1644_v58, %v1059_v2 }
 0x431   :  { %v1089_v3 = vadd.f32 %v1088_v15, %v1060_v19 }
 0x433   :  { %v1104_v4 = vsel %vm1098_vm1, %v1089_v3, -1e+30 }
 0x434   :  { %1117 = vmax.xlane.f32.xlu0 %v1104_v4 }
 0x436   :  { %v1062_v6 = vpop.f32.mrf.mxu2 }
 0x437   :  { %v1063_v63 = vadd.f32 %v1644_v58, %v1062_v6 }
 0x439   :  { %v1092_v7 = vadd.f32 %v1091_v5, %v1063_v63 }
 0x43b   :  { %v1105_v8 = vsel %vm1098_vm1, %v1092_v7, -1e+30 }
 0x43c   :  { %1119 = vmax.xlane.f32.xlu1 %v1105_v8 }
 0x43e   :  { %v1064_v9 = vpop.f32.mrf.mxu2 }
 0x43f   :  { %v1065_v10 = vadd.f32 %v1644_v58, %v1064_v9 }
 0x441   :  { %v1094_v12 = vadd.f32 %v1093_v11, %v1065_v10 }
 0x443   :  { %v1106_v33 = vsel %vm1098_vm1, %v1094_v12, -1e+30 }
 0x444   :  { %1121 = vmax.xlane.f32.xlu2 %v1106_v33 }
 0x47f   :  { %v1108_v13 = vpop.xlane.xlu2 %1107 }
 0x480   :  { %v1123_v16 = vsub.f32 %v1099_v56, %v1108_v13 }
 0x482   :  { %v1131_v35 = vmul.f32 1.442695, %v1123_v16 }
 0x484   :  { %1645 = vpow2.f32 %v1131_v35 }
 0x487   :  { %v1110_v17 = vpop.xlane.xlu0 %1109 }
 0x488   :  { %v1124_v20 = vsub.f32 %v1100_v51, %v1110_v17 }
 0x48a   :  { %v1646_v21 = vpop.eup %1645  ;;  %v1133_v40 = vmul.f32 1.442695, %v1124_v20 }
 0x48b   :  { %1147 = vadd.xlane.f32.xlu0 %v1646_v21 }
 0x48c   :  { %1647 = vpow2.f32 %v1133_v40 }
 0x48f   :  { %v1112_v22 = vpop.xlane.xlu1 %1111 }
 0x490   :  { %v1125_v23 = vsub.f32 %v1101_v55, %v1112_v22 }
 0x492   :  { %v1648_v24 = vpop.eup %1647  ;;  %v1135_v25 = vmul.f32 1.442695, %v1125_v23 }
 0x493   :  { %1149 = vadd.xlane.f32.xlu1 %v1648_v24 }
 0x494   :  { %1649 = vpow2.f32 %v1135_v25 }
 0x497   :  { %v1114_v43 = vpop.xlane.xlu2 %1113 }
 0x498   :  { %v1126_v26 = vsub.f32 %v1102_v62, %v1114_v43 }
 0x49a   :  { %v1650_v27 = vpop.eup %1649  ;;  %v1137_v28 = vmul.f32 1.442695, %v1126_v26 }
 0x49b   :  { %1151 = vadd.xlane.f32.xlu2 %v1650_v27 }
 0x49c   :  { %1651 = vpow2.f32 %v1137_v28 }
 0x49f   :  { %v1116_v47 = vpop.xlane.xlu2 %1115 }
 0x4a0   :  { %v1127_v29 = vsub.f32 %v1103_v18, %v1116_v47 }
 0x4a2   :  { %v1652_v30 = vpop.eup %1651  ;;  %v1139_v32 = vmul.f32 1.442695, %v1127_v29 }
 0x4a3   :  { %1153 = vadd.xlane.f32.xlu0 %v1652_v30 }
 0x4a4   :  { %1653 = vpow2.f32 %v1139_v32 }
 0x4a7   :  { %v1118_v34 = vpop.xlane.xlu0 %1117 }
 0x4a8   :  { %v1128_v36 = vsub.f32 %v1104_v4, %v1118_v34 }
 0x4aa   :  { %v1654_v50 = vpop.eup %1653  ;;  %v1141_v37 = vmul.f32 1.442695, %v1128_v36 }
 0x4ab   :  { %1155 = vadd.xlane.f32.xlu1 %v1654_v50 }
 0x4ac   :  { %1655 = vpow2.f32 %v1141_v37 }
 0x4af   :  { %v1120_v58 = vpop.xlane.xlu1 %1119 }
 0x4b0   :  { %v1129_v38 = vsub.f32 %v1105_v8, %v1120_v58 }
 0x4b2   :  { %v1656_v39 = vpop.eup %1655  ;;  %v1143_v41 = vmul.f32 1.442695, %v1129_v38 }
 0x4b3   :  { %1157 = vadd.xlane.f32.xlu2 %v1656_v39 }
 0x4b4   :  { %1657 = vpow2.f32 %v1143_v41 }
 0x4b7   :  { %v1122_v42 = vpop.xlane.xlu2 %1121 }
 0x4b8   :  { %v1130_v44 = vsub.f32 %v1106_v33, %v1122_v42 }
 0x4ba   :  { %v1658_v56 = vpop.eup %1657  ;;  %v1145_v45 = vmul.f32 1.442695, %v1130_v44 }
 0x4bb   :  { %1159 = vadd.xlane.f32.xlu0 %v1658_v56 }
 0x4bc   :  { %1659 = vpow2.f32 %v1145_v45 }
 0x4c2   :  { %v1660_v46 = vpop.eup %1659 }
 0x4c3   :  { %1161 = vadd.xlane.f32.xlu1 %v1660_v46 }
 0x4fe   :  { %v1148_v48 = vpop.xlane.xlu0 %1147 }
 0x4ff   :  { %1661 = vlog2.f32 %v1148_v48 }
 0x505   :  { %v1662_v49 = vpop.eup %1661 }
 0x506   :  { %v1164_v51 = vmul.f32 0.6931472, %v1662_v49  ;;  %v1150_v52 = vpop.xlane.xlu1 %1149 }
 0x507   :  { %1663 = vlog2.f32 %v1150_v52 }
 0x508   :  { %v1179_v31 = vsub.f32 %v1123_v16, %v1164_v51 }
 0x50a   :  { %1187 = vst [vmem:[#allocation6] sm:$0xff] %v1179_v31 }
 0x50d   :  { %v1664_v53 = vpop.eup %1663 }
 0x50e   :  { %v1166_v54 = vmul.f32 0.6931472, %v1664_v53  ;;  %v1152_v55 = vpop.xlane.xlu2 %1151 }
 0x50f   :  { %1665 = vlog2.f32 %v1152_v55 }
 0x510   :  { %v1180_v57 = vsub.f32 %v1124_v20, %v1166_v54 }
 0x512   :  { %1188 = vst [vmem:[#allocation6 + $0x8] sm:$0xff] %v1180_v57 }
 0x515   :  { %v1666_v59 = vpop.eup %1665 }
 0x516   :  { %v1168_v60 = vmul.f32 0.6931472, %v1666_v59  ;;  %v1154_v61 = vpop.xlane.xlu0 %1153 }
 0x517   :  { %1667 = vlog2.f32 %v1154_v61 }
 0x518   :  { %v1181_v62 = vsub.f32 %v1125_v23, %v1168_v60 }
 0x51a   :  { %1189 = vst [vmem:[#allocation6 + $0x10] sm:$0xff] %v1181_v62 }
 0x51d   :  { %v1668_v0 = vpop.eup %1667 }
 0x51e   :  { %v1170_v14 = vmul.f32 0.6931472, %v1668_v0  ;;  %v1156_v1 = vpop.xlane.xlu1 %1155 }
 0x51f   :  { %1669 = vlog2.f32 %v1156_v1 }
 0x520   :  { %v1182_v18 = vsub.f32 %v1126_v26, %v1170_v14 }
 0x522   :  { %1190 = vst [vmem:[#allocation6 + $0x18] sm:$0xff] %v1182_v18 }
 0x525   :  { %v1670_v15 = vpop.eup %1669 }
 0x526   :  { %v1172_v2 = vmul.f32 0.6931472, %v1670_v15  ;;  %v1158_v19 = vpop.xlane.xlu2 %1157 }
 0x527   :  { %1671 = vlog2.f32 %v1158_v19 }
 0x528   :  { %v1183_v3 = vsub.f32 %v1127_v29, %v1172_v2 }
 0x52a   :  { %1191 = vst [vmem:[#allocation6 + $0x20] sm:$0xff] %v1183_v3 }
 0x52d   :  { %v1672_v4 = vpop.eup %1671 }
 0x52e   :  { %v1174_v5 = vmul.f32 0.6931472, %v1672_v4  ;;  %v1160_v6 = vpop.xlane.xlu0 %1159 }
 0x52f   :  { %1673 = vlog2.f32 %v1160_v6 }
 0x530   :  { %v1184_v63 = vsub.f32 %v1128_v36, %v1174_v5 }
 0x532   :  { %1192 = vst [vmem:[#allocation6 + $0x28] sm:$0xff] %v1184_v63 }
 0x535   :  { %v1674_v7 = vpop.eup %1673 }
 0x536   :  { %v1176_v8 = vmul.f32 0.6931472, %v1674_v7  ;;  %v1162_v9 = vpop.xlane.xlu1 %1161 }
 0x537   :  { %1675 = vlog2.f32 %v1162_v9 }
 0x538   :  { %v1185_v10 = vsub.f32 %v1129_v38, %v1176_v8 }
 0x53a   :  { %1193 = vst [vmem:[#allocation6 + $0x30] sm:$0xff] %v1185_v10 }
 0x53d   :  { %v1676_v11 = vpop.eup %1675 }
 0x53e   :  { %v1178_v12 = vmul.f32 0.6931472, %v1676_v11 }
 0x540   :  { %v1186_v33 = vsub.f32 %v1130_v44, %v1178_v12 }
 0x542   :  { %1194 = vst [vmem:[#allocation6 + $0x38] sm:$0xff] %v1186_v33 }
 0x543   :  { %1207 = dma.vmem_to_hbm [thread:$0]  %s1200_s8, 1024, %s1202_s11, [#allocation5], %s1734_s12, %s1734_s12, %s1735_s13  }
 0x544   :  { %1727 = dma.done.wait [#allocation5], 1024  }
 0x545   :  { %1728 = vsyncadd [#allocation5], 4294966272 }
 0x546   :  { %1212 = vsyncpa [#allocation4], 1 }
 0x547   :  { %1213 = vsyncpa [#allocation5], 1 }

</bundles_post_ra>
